<compile_context>
chip_gen: v5e
topology: v5e:2x2
jax: 0.10.0
libtpu: 0.0.40
codegen_flags: <defaults>
</compile_context>

<pallas_src>
import jax
import jax.numpy as jnp
from jax.experimental import pallas as pl
from jax.experimental.pallas import tpu as pltpu


_MIN_PALLAS_ELEMS = 8 * 128  # below this, XLA's fused elementwise op wins


def _linear_kernel(m_ref, b_ref, x_ref, o_ref):
    # m_ref / b_ref are (1, 1) f32 scalars in SMEM; x_ref / o_ref are VMEM tiles.
    m = m_ref[0, 0]
    b = b_ref[0, 0]
    o_ref[...] = (x_ref[...].astype(jnp.float32) * m + b).astype(o_ref.dtype)


def _vmem_capacity_bytes():
    try:
        return int(pltpu.get_tpu_info().vmem_capacity_bytes)
    except Exception:  # pragma: no cover - conservative (v7x per-TC) fallback
        return 64 * 1024 * 1024


def _num_tensorcores():
    """Best-effort TensorCore-per-chip count; defaults to 1 (safe on all gens)."""
    try:
        info = pltpu.get_tpu_info()
        for attr in ("num_cores", "core_count", "num_tensorcores",
                     "tensorcores_per_chip", "cores_per_chip"):
            v = getattr(info, attr, None)
            if v:
                return int(v)
    except Exception:
        pass
    return 1


def _sublane(dtype):
    # Sublane packing: 8 rows for 32-bit, 16 for 16-bit, 32 for 8-bit dtypes.
    return max(8, 32 // max(1, jnp.dtype(dtype).itemsize))


def _pick_block(rows, cols, in_dtype, out_dtype):
    """Large lane-dense block that fits the chip generation's VMEM budget."""
    vmem = _vmem_capacity_bytes()
    # 16 MiB buffers on 128 MiB-VMEM chips (v5e/v6e); 8 MiB on 64 MiB/TC (v7x).
    per_buf_cap = (16 << 20) if vmem >= (100 << 20) else (8 << 20)

    # Column block: full extent when modest, else a large multiple of 128.
    bc = cols if cols <= 4096 else 2048

    sub = max(_sublane(in_dtype), _sublane(out_dtype))
    isz = max(jnp.dtype(in_dtype).itemsize, jnp.dtype(out_dtype).itemsize)
    row_cap = min(2048, max(sub, per_buf_cap // max(1, bc * isz)))
    if rows <= row_cap:
        br = rows  # full extent -> no divisibility constraint
    else:
        br = max(sub, (row_cap // sub) * sub)
    return br, bc, vmem


def _run_pallas(x2, m_s, b_s, out_dtype):
    R, C = x2.shape
    br, bc, vmem = _pick_block(R, C, x2.dtype, out_dtype)

    # NOTE: ragged last blocks are safe for this elementwise op only -- Pallas
    # clips the input DMA and masks the tail-block writes.  A reduction kernel
    # could NOT silently inherit this assumption.
    grid = (pl.cdiv(R, br), pl.cdiv(C, bc))

    in_blk = br * bc * jnp.dtype(x2.dtype).itemsize
    out_blk = br * bc * jnp.dtype(out_dtype).itemsize
    vmem_limit = int(min(vmem - (8 << 20),
                         max(32 << 20, 2 * (in_blk + out_blk) + (8 << 20))))

    # v7x: shard the row axis across the 2 TensorCores; elsewhere plain parallel.
    dim_sem = [pltpu.PARALLEL, pltpu.PARALLEL]
    if grid[0] >= 2 and _num_tensorcores() >= 2:
        dim_sem[0] = pltpu.CORE_PARALLEL

    m2 = jnp.asarray(m_s, jnp.float32).reshape(1, 1)
    b2 = jnp.asarray(b_s, jnp.float32).reshape(1, 1)

    # Note: input_output_aliases={2: 0} could donate x when dtype/shape match and
    # the caller no longer needs it; skipped here because the demo reuses x.
    return pl.pallas_call(
        _linear_kernel,
        out_shape=jax.ShapeDtypeStruct((R, C), out_dtype),
        grid_spec=pltpu.PrefetchScalarGridSpec(
            num_scalar_prefetch=0,
            grid=grid,
            in_specs=[
                pl.BlockSpec(memory_space=pltpu.MemorySpace.SMEM),   # m
                pl.BlockSpec(memory_space=pltpu.MemorySpace.SMEM),   # b
                pl.BlockSpec((br, bc), lambda i, j: (i, j)),         # x tile
            ],
            out_specs=pl.BlockSpec((br, bc), lambda i, j: (i, j)),
        ),
        compiler_params=pltpu.CompilerParams(
            dimension_semantics=tuple(dim_sem),
            vmem_limit_bytes=vmem_limit,
        ),
    )(m2, b2, x2)


def linear_model(x, m, b):
    """Computes m * x + b elementwise (LinearModel.forward) via a Pallas TPU kernel."""
    x = jnp.asarray(x)
    out_dtype = jnp.result_type(x.dtype, jnp.float32)  # torch-style promotion
    m_s = jnp.asarray(m, jnp.float32).reshape(-1)[0]
    b_s = jnp.asarray(b, jnp.float32).reshape(-1)[0]

    n = int(x.size)
    if n < _MIN_PALLAS_ELEMS:
        # Tiny inputs: pallas_call dispatch + grid-step overhead dominates,
        # XLA's fused elementwise op is strictly faster.
        return (m_s * x.astype(out_dtype) + b_s).astype(out_dtype)

    orig_shape = x.shape

    if x.ndim >= 2 and x.shape[-1] % 128 == 0:
        # Path A: last dim already lane-dense -> zero-copy reshape, no padding.
        out2 = _run_pallas(x.reshape(-1, x.shape[-1]), m_s, b_s, out_dtype)
        return out2.reshape(orig_shape)

    flat = x.reshape(-1)
    for c in (2048, 1024, 512, 256, 128):
        if n % c == 0:
            # Path B: narrow / unaligned last dim but total size is a multiple of
            # 128 -> zero-copy re-layout as a lane-dense slab (unmasked stores).
            out2 = _run_pallas(flat.reshape(-1, c), m_s, b_s, out_dtype)
            return out2.reshape(orig_shape)

    # Path C: total size not a multiple of 128 -> pad the flat tail (<128 elems)
    # so stores stay lane-dense.  Costs one extra HBM pass (pad + slice); only
    # hit for truly unaligned sizes.
    cols = 128
    pad = (-n) % cols
    x2 = jnp.pad(flat, (0, pad)).reshape(-1, cols)
    out2 = _run_pallas(x2, m_s, b_s, out_dtype)
    return out2.reshape(-1)[:n].reshape(orig_shape)


if __name__ == "__main__":
    key = jax.random.PRNGKey(0)
    k_x, k_m, k_b = jax.random.split(key, 3)

    # Parameters: same shapes as torch.rand(1) in LinearModel.__init__.
    m = jax.random.uniform(k_m, (1,), dtype=jnp.float32)
    b = jax.random.uniform(k_b, (1,), dtype=jnp.float32)

    def ref(x):
        return m[0] * x.astype(jnp.result_type(x.dtype, jnp.float32)) + b[0]

    # 1) Lane-dense 2-D input (Path A: zero-copy, single full-extent block).
    x_a = jax.random.normal(k_x, (64, 256), dtype=jnp.float32)
    y_a = jax.block_until_ready(linear_model(x_a, m, b))
    assert jnp.allclose(y_a, ref(x_a), atol=1e-6, rtol=1e-6), "mismatch (Path A)"

    # 2) Narrow last dim, total size multiple of 2048 (Path B: lane-dense slab).
    x_b = jax.random.normal(jax.random.PRNGKey(1), (512, 8), dtype=jnp.float32)
    y_b = jax.block_until_ready(linear_model(x_b, m, b))
    assert jnp.allclose(y_b, ref(x_b), atol=1e-6, rtol=1e-6), "mismatch (Path B)"

    # 3) Fully unaligned shape (Path C: small tail pad + slice).
    x_c = jax.random.normal(jax.random.PRNGKey(2), (50, 200), dtype=jnp.float32)
    y_c = jax.block_until_ready(linear_model(x_c, m, b))
    assert jnp.allclose(y_c, ref(x_c), atol=1e-6, rtol=1e-6), "mismatch (Path C)"

    # 4) bf16 input -> float32 output (torch-style promotion against f32 params).
    x_d = jax.random.normal(jax.random.PRNGKey(3), (64, 256), dtype=jnp.bfloat16)
    y_d = jax.block_until_ready(linear_model(x_d, m, b))
    assert y_d.dtype == jnp.float32, "bf16 input should promote to f32 output"
    assert jnp.allclose(y_d, ref(x_d), atol=1e-2, rtol=1e-2), "mismatch (bf16)"

    # 5) The torch-spec input [1, 2, 3, 4] (tiny-input fused-XLA fallback).
    x_vec = jnp.array([1.0, 2.0, 3.0, 4.0], dtype=jnp.float32)
    y_vec = jax.block_until_ready(linear_model(x_vec, m, b))
    assert jnp.allclose(y_vec, ref(x_vec), atol=1e-6, rtol=1e-6), "mismatch (1-D)"

    print("KERNEL_OK")
</pallas_src>

<mosaic_0001>
module attributes {stable_mosaic.version = 11 : i64} {
  func.func @_linear_kernel(%arg0: i32, %arg1: i32, %arg2: memref<1x1xf32, #tpu.memory_space<smem>>, %arg3: memref<1x1xf32, #tpu.memory_space<smem>>, %arg4: memref<64x256xf32, #tpu.memory_space<vmem>>, %arg5: memref<64x256xf32, #tpu.memory_space<vmem>>) attributes {dimension_semantics = [#tpu.dimension_semantics<parallel>, #tpu.dimension_semantics<parallel>], iteration_bounds = array<i64: 1, 1>, scalar_prefetch = 0 : i64, scratch_operands = 0 : i64, tpu.core_type = #tpu.core_type<tc>, window_params = [{transform_indices = @transform_0, window_bounds = array<i64: 1, 1>}, {transform_indices = @transform_1, window_bounds = array<i64: 1, 1>}, {transform_indices = @transform_2, window_bounds = array<i64: 64, 256>}, {transform_indices = @transform_3, window_bounds = array<i64: 64, 256>}]} {
    %c0 = arith.constant 0 : index
    %c0_0 = arith.constant 0 : index
    %0 = memref.load %arg2[%c0, %c0_0] : memref<1x1xf32, #tpu.memory_space<smem>>
    %c0_1 = arith.constant 0 : index
    %c0_2 = arith.constant 0 : index
    %1 = memref.load %arg3[%c0_1, %c0_2] : memref<1x1xf32, #tpu.memory_space<smem>>
    %c0_3 = arith.constant 0 : index
    %c0_4 = arith.constant 0 : index
    %2 = vector.load %arg4[%c0_3, %c0_4] : memref<64x256xf32, #tpu.memory_space<vmem>>, vector<64x256xf32>
    %3 = vector.broadcast %0 : f32 to vector<64x256xf32>
    %4 = arith.mulf %2, %3 : vector<64x256xf32>
    %5 = vector.broadcast %1 : f32 to vector<64x256xf32>
    %6 = arith.addf %4, %5 : vector<64x256xf32>
    %c0_5 = arith.constant 0 : index
    %c0_6 = arith.constant 0 : index
    %7 = vector.load %arg5[%c0_5, %c0_6] : memref<64x256xf32, #tpu.memory_space<vmem>>, vector<64x256xf32>
    tpu.vector_store %arg5[%c0_5, %c0_6], %6 {strides = array<i32>} : memref<64x256xf32, #tpu.memory_space<vmem>>, vector<64x256xf32>,
    return
  }
  func.func @transform_0(%arg0: i32, %arg1: i32) -> (i32, i32) {
    %c0_i32 = arith.constant 0 : i32
    %c0_i32_0 = arith.constant 0 : i32
    %c0_i32_1 = arith.constant 0 : i32
    return %c0_i32, %c0_i32_0 : i32, i32
  }
  func.func @transform_1(%arg0: i32, %arg1: i32) -> (i32, i32) {
    %c0_i32 = arith.constant 0 : i32
    %c0_i32_0 = arith.constant 0 : i32
    %c0_i32_1 = arith.constant 0 : i32
    return %c0_i32, %c0_i32_0 : i32, i32
  }
  func.func @transform_2(%arg0: i32, %arg1: i32) -> (i32, i32) {
    %c0_i32 = arith.constant 0 : i32
    return %arg0, %arg1 : i32, i32
  }
  func.func @transform_3(%arg0: i32, %arg1: i32) -> (i32, i32) {
    %c0_i32 = arith.constant 0 : i32
    return %arg0, %arg1 : i32, i32
  }
}

</mosaic_0001>

<bundles_post_ra>
// kernel: tpu_custom_call.1
= control target key start
LH: loop header
LB: loop body
LE: loop exit
PB: predicated region body
PF: predicated region fallthrough
CT: control target
= control target key end

     0   :  { %10 = vsyncpa [#allocation5], 0  ;;  %s218_s0 = inlined_call_operand.<no memory space> [shape: f32[1,1], index: 0, kind: input, shape index: {}]   ;;  %s219_s1 = inlined_call_operand.<no memory space> [shape: f32[1,1], index: 1, kind: input, shape index: {}]   ;;  %s220_s2 = inlined_call_operand.hbm [shape: f32[64,256], index: 2, kind: input, shape index: {}]   ;;  %s221_s3 = inlined_call_operand.hbm [shape: f32[64,256], index: 3, kind: output, shape index: {}]  }
   0x1   :  { %11 = vsyncpa [#allocation6], 0  ;;  %s20_s14 = sshll.u32 %s220_s2, 4  ;;  %s176_s15 = smov [#allocation4]   ;;  %s21_s14 = int_to_ptr.hbm [resolvable:$true] %s20_s14 }
   0x2   :  { %s22_s16 = sshll.u32 %s176_s15, 4  ;;  %s177_s17 = smov 256   ;;  %s23_s16 = int_to_ptr.vmem [resolvable:$true] %s22_s16 }
   0x3   :  { %s178_s18 = smov 16  }
   0x4   :  { %28 = dma.hbm_to_vmem [thread:$0]  %s21_s14, 2048, %s23_s16, [#allocation5], %s177_s17, %s177_s17, %s178_s18  }
   0x5   :  { %172 = dma.done.wait [#allocation5], 2048  }
   0x6   :  { %173 = vsyncadd [#allocation5], 4294965248  ;;  %v51_v0 = vstv %s218_s0  ;;  %v35_v1 = vld [vmem:[#allocation4] sm:$0xff]  ;;  %v68_v2 = vstv %s219_s1  ;;  %v36_v3 = vld [vmem:[#allocation4 + $0x8] sm:$0xff]  ;;  %s179_s0 = smov [#allocation7]   ;;  %s107_s24 = sshll.u32 %s221_s3, 4  ;;  %s108_s24 = int_to_ptr.hbm [resolvable:$true] %s107_s24 }
   0x7   :  { %v37_v4 = vld [vmem:[#allocation4 + $0x10] sm:$0xff]  ;;  %v52_v5 = vmul.f32 %v51_v0, %v35_v1  ;;  %v53_v6 = vmul.f32 %v51_v0, %v36_v3  ;;  %v38_v8 = vld [vmem:[#allocation4 + $0x18] sm:$0xff]  ;;  %v39_v9 = vld [vmem:[#allocation4 + $0x20] sm:$0xff]  ;;  %s105_s1 = sshll.u32 %s179_s0, 4  ;;  %s106_s1 = int_to_ptr.vmem [resolvable:$true] %s105_s1 }
   0x8   :  { %v54_v7 = vmul.f32 %v51_v0, %v37_v4  ;;  %v40_v10 = vld [vmem:[#allocation4 + $0x28] sm:$0xff]  ;;  %v55_v11 = vmul.f32 %v51_v0, %v38_v8  ;;  %v56_v12 = vmul.f32 %v51_v0, %v39_v9  ;;  %v41_v14 = vld [vmem:[#allocation4 + $0x30] sm:$0xff]  ;;  %v42_v15 = vld [vmem:[#allocation4 + $0x38] sm:$0xff] }
   0x9   :  { %v57_v13 = vmul.f32 %v51_v0, %v40_v10  ;;  %v43_v16 = vld [vmem:[#allocation4 + $0x40] sm:$0xff]  ;;  %v69_v17 = vadd.f32 %v68_v2, %v52_v5  ;;  %v70_v18 = vadd.f32 %v68_v2, %v53_v6  ;;  %v58_v20 = vmul.f32 %v51_v0, %v41_v14  ;;  %v44_v21 = vld [vmem:[#allocation4 + $0x48] sm:$0xff]  ;;  %v45_v24 = vld [vmem:[#allocation4 + $0x50] sm:$0xff] }
   0xa   :  { %v71_v19 = vadd.f32 %v68_v2, %v54_v7  ;;  %v72_v22 = vadd.f32 %v68_v2, %v55_v11  ;;  %v59_v23 = vmul.f32 %v51_v0, %v42_v15  ;;  %v73_v25 = vadd.f32 %v68_v2, %v56_v12  ;;  %v46_v27 = vld [vmem:[#allocation4 + $0x58] sm:$0xff]  ;;  %v47_v30 = vld [vmem:[#allocation4 + $0x60] sm:$0xff]  ;;  %v48_v33 = vld [vmem:[#allocation4 + $0x68] sm:$0xff] }
   0xb   :  { %85 = vst [vmem:[#allocation7] sm:$0xff] %v69_v17  ;;  %v60_v26 = vmul.f32 %v51_v0, %v43_v16  ;;  %v74_v28 = vadd.f32 %v68_v2, %v57_v13  ;;  %v61_v29 = vmul.f32 %v51_v0, %v44_v21  ;;  %v75_v31 = vadd.f32 %v68_v2, %v58_v20  ;;  %v49_v36 = vld [vmem:[#allocation4 + $0x70] sm:$0xff]  ;;  %v50_v39 = vld [vmem:[#allocation4 + $0x78] sm:$0xff] }
   0xc   :  { %86 = vst [vmem:[#allocation7 + $0x8] sm:$0xff] %v70_v18  ;;  %v62_v32 = vmul.f32 %v51_v0, %v45_v24  ;;  %v76_v34 = vadd.f32 %v68_v2, %v59_v23  ;;  %v63_v35 = vmul.f32 %v51_v0, %v46_v27  ;;  %v64_v38 = vmul.f32 %v51_v0, %v47_v30 }
   0xd   :  { %87 = vst [vmem:[#allocation7 + $0x10] sm:$0xff] %v71_v19  ;;  %v77_v37 = vadd.f32 %v68_v2, %v60_v26  ;;  %v78_v40 = vadd.f32 %v68_v2, %v61_v29  ;;  %v65_v41 = vmul.f32 %v51_v0, %v48_v33  ;;  %v66_v43 = vmul.f32 %v51_v0, %v49_v36 }
   0xe   :  { %88 = vst [vmem:[#allocation7 + $0x18] sm:$0xff] %v72_v22  ;;  %v79_v42 = vadd.f32 %v68_v2, %v62_v32  ;;  %v80_v44 = vadd.f32 %v68_v2, %v63_v35  ;;  %v67_v45 = vmul.f32 %v51_v0, %v50_v39  ;;  %v81_v46 = vadd.f32 %v68_v2, %v64_v38 }
   0xf   :  { %89 = vst [vmem:[#allocation7 + $0x20] sm:$0xff] %v73_v25  ;;  %v82_v47 = vadd.f32 %v68_v2, %v65_v41  ;;  %v83_v48 = vadd.f32 %v68_v2, %v66_v43 }
  0x10   :  { %90 = vst [vmem:[#allocation7 + $0x28] sm:$0xff] %v74_v28  ;;  %v84_v49 = vadd.f32 %v68_v2, %v67_v45 }
  0x11   :  { %91 = vst [vmem:[#allocation7 + $0x30] sm:$0xff] %v75_v31 }
  0x12   :  { %92 = vst [vmem:[#allocation7 + $0x38] sm:$0xff] %v76_v34 }
  0x13   :  { %93 = vst [vmem:[#allocation7 + $0x40] sm:$0xff] %v77_v37 }
  0x14   :  { %94 = vst [vmem:[#allocation7 + $0x48] sm:$0xff] %v78_v40 }
  0x15   :  { %95 = vst [vmem:[#allocation7 + $0x50] sm:$0xff] %v79_v42 }
  0x16   :  { %96 = vst [vmem:[#allocation7 + $0x58] sm:$0xff] %v80_v44 }
  0x17   :  { %97 = vst [vmem:[#allocation7 + $0x60] sm:$0xff] %v81_v46 }
  0x18   :  { %98 = vst [vmem:[#allocation7 + $0x68] sm:$0xff] %v82_v47 }
  0x19   :  { %99 = vst [vmem:[#allocation7 + $0x70] sm:$0xff] %v83_v48 }
  0x1a   :  { %100 = vst [vmem:[#allocation7 + $0x78] sm:$0xff] %v84_v49 }
  0x1b   :  { %113 = dma.vmem_to_hbm [thread:$0]  %s106_s1, 2048, %s108_s24, [#allocation6], %s177_s17, %s177_s17, %s178_s18  }
  0x1c   :  { %174 = dma.done.wait [#allocation6], 2048  }
  0x1d   :  { %175 = vsyncadd [#allocation6], 4294965248 }
  0x1e   :  { %118 = vsyncpa [#allocation5], 1 }
  0x1f   :  { %119 = vsyncpa [#allocation6], 1 }

</bundles_post_ra>
